<compile_context>
chip_gen: v6e
topology: v6e:2x2x1
jax: 0.10.0
libtpu: 0.0.40
codegen_flags: <defaults>
</compile_context>

<pallas_src>
import functools

import jax
import jax.numpy as jnp
from jax.experimental import pallas as pl
from jax.experimental.pallas import tpu as pltpu


def _round_up(n, m):
    return ((n + m - 1) // m) * m


def _value_net_kernel(x_ref, w1_ref, b1_ref, w2_ref, b2_ref, o_ref, *,
                      matmul_dtype):
    # fc1 on the MXU (f32 accumulation); bias add + ReLU stay in f32 on the VPU.
    x = x_ref[...].astype(matmul_dtype)                      # (TB, S)
    w1 = w1_ref[...].astype(matmul_dtype)                    # (S, H)
    h = jnp.dot(x, w1, preferred_element_type=jnp.float32)   # (TB, H) f32
    h = jnp.maximum(h + b1_ref[...], 0.0)                    # bias + ReLU (f32)

    # fc2 (output width 1): VPU multiply + lane reduction instead of a
    # 1-column MXU matmul; w2 is passed as a (1, H) row and broadcast.
    out = jnp.sum(h * w2_ref[...], axis=-1, keepdims=True)   # (TB, 1)
    o_ref[...] = out + b2_ref[0, 0]                          # scalar bias from SMEM


def value_net_forward(x, w1, b1, w2, b2, *, block_batch=None, use_bf16=False):
    """Forward pass of ValueNet.

    x:  (B, state_dim) f32
    w1: (state_dim, hidden_dim)   (pre-transposed vs. PyTorch's (out, in))
    b1: (hidden_dim,) or (1, hidden_dim)
    w2: (hidden_dim, 1), (1, hidden_dim) or (hidden_dim,)
    b2: scalar / (1,) / (1, 1)
    Returns (B, 1) f32, matching ValueNet.forward.
    """
    B, S = x.shape
    H = w1.shape[1]

    x = jnp.asarray(x, jnp.float32)
    w1 = jnp.asarray(w1, jnp.float32)
    b1 = jnp.asarray(b1, jnp.float32).reshape(1, H)
    w2_row = jnp.asarray(w2, jnp.float32).reshape(1, H)
    b2 = jnp.asarray(b2, jnp.float32).reshape(1, 1)

    # Batch tile: largest multiple of 8 up to 1024 rows (double-buffered f32 x
    # tiles stay well within the 32 MiB scoped-VMEM default, v7x included).
    if block_batch is None:
        block_batch = 1024
    tb = _round_up(min(block_batch, _round_up(B, 8)), 8)

    # Pad the batch so the grid divides evenly; slice the result back.
    Bp = _round_up(B, tb)
    if Bp != B:
        x = jnp.pad(x, ((0, Bp - B), (0, 0)))
    grid = (Bp // tb,)

    matmul_dtype = jnp.bfloat16 if use_bf16 else jnp.float32
    if use_bf16:
        # Weights are grid-resident: one-time cast, halves streamed x bytes too.
        w1 = w1.astype(jnp.bfloat16)

    kernel = functools.partial(_value_net_kernel, matmul_dtype=matmul_dtype)

    itemsize = 2 if use_bf16 else 4
    flops = 2 * Bp * S * H + 2 * Bp * H
    bytes_accessed = (Bp * S * itemsize          # x (streamed)
                      + S * H * itemsize         # W1
                      + H * 4 + H * 4 + 4        # b1, w2, b2
                      + Bp * 4)                  # output

    out = pl.pallas_call(
        kernel,
        out_shape=jax.ShapeDtypeStruct((Bp, 1), jnp.float32),
        grid=grid,
        in_specs=[
            pl.BlockSpec((tb, S), lambda i: (i, 0)),   # x: batch-tiled, pipelined
            pl.BlockSpec((S, H), lambda i: (0, 0)),    # W1: VMEM-resident
            pl.BlockSpec((1, H), lambda i: (0, 0)),    # b1: VMEM-resident
            pl.BlockSpec((1, H), lambda i: (0, 0)),    # W2 row: VMEM-resident
            pl.BlockSpec(memory_space=pltpu.MemorySpace.SMEM),  # b2 scalar
        ],
        out_specs=pl.BlockSpec((tb, 1), lambda i: (i, 0)),
        compiler_params=pltpu.CompilerParams(
            dimension_semantics=("parallel",)),
        cost_estimate=pl.CostEstimate(
            flops=flops, transcendentals=0, bytes_accessed=bytes_accessed),
    )(x, w1, b1, w2_row, b2)

    return out[:B]


def init_params(key, state_dim, hidden_dim):
    """Deterministic synthetic params, PyTorch-Linear-like uniform init.

    Stored pre-transposed to (in, out) layout for the kernel.
    """
    k1, k2, k3, k4 = jax.random.split(key, 4)
    lim1 = 1.0 / jnp.sqrt(state_dim)
    lim2 = 1.0 / jnp.sqrt(hidden_dim)
    w1 = jax.random.uniform(k1, (state_dim, hidden_dim), jnp.float32, -lim1, lim1)
    b1 = jax.random.uniform(k2, (1, hidden_dim), jnp.float32, -lim1, lim1)
    w2 = jax.random.uniform(k3, (hidden_dim, 1), jnp.float32, -lim2, lim2)
    b2 = jax.random.uniform(k4, (1, 1), jnp.float32, -lim2, lim2)
    return w1, b1, w2, b2


if __name__ == "__main__":
    # Small shapes consistent with the module (e.g. CartPole: state_dim=4).
    batch, state_dim, hidden_dim = 8, 4, 32

    key = jax.random.PRNGKey(0)
    kx, kp = jax.random.split(key)
    x = jax.random.normal(kx, (batch, state_dim), jnp.float32)
    w1, b1, w2, b2 = init_params(kp, state_dim, hidden_dim)

    out = value_net_forward(x, w1, b1, w2, b2)
    out = jax.block_until_ready(out)

    # Pure-JAX reference for sanity (fp32 path -> tight tolerance).
    ref = jnp.maximum(x @ w1 + b1, 0.0) @ w2 + b2
    assert out.shape == (batch, 1)
    assert jnp.allclose(out, ref, atol=1e-5, rtol=1e-5)

    # Also exercise a batch that is not a multiple of the tile size.
    x2 = jax.random.normal(kx, (13, state_dim), jnp.float32)
    out2 = jax.block_until_ready(value_net_forward(x2, w1, b1, w2, b2))
    ref2 = jnp.maximum(x2 @ w1 + b1, 0.0) @ w2 + b2
    assert out2.shape == (13, 1)
    assert jnp.allclose(out2, ref2, atol=1e-5, rtol=1e-5)

    print("KERNEL_OK")
</pallas_src>

<mosaic_0001>
module attributes {stable_mosaic.version = 11 : i64} {
  func.func @_value_net_kernel(%arg0: i32, %arg1: memref<8x4xf32, #tpu.memory_space<vmem>>, %arg2: memref<4x32xf32, #tpu.memory_space<vmem>>, %arg3: memref<1x32xf32, #tpu.memory_space<vmem>>, %arg4: memref<1x32xf32, #tpu.memory_space<vmem>>, %arg5: memref<1x1xf32, #tpu.memory_space<smem>>, %arg6: memref<8x1xf32, #tpu.memory_space<vmem>>) attributes {dimension_semantics = [#tpu.dimension_semantics<parallel>], iteration_bounds = array<i64: 1>, scalar_prefetch = 0 : i64, scratch_operands = 0 : i64, tpu.core_type = #tpu.core_type<tc>, window_params = [{transform_indices = @transform_0, window_bounds = array<i64: 8, 4>}, {pipeline_mode = #tpu.pipeline_mode<synchronous>, transform_indices = @transform_1, window_bounds = array<i64: 4, 32>}, {pipeline_mode = #tpu.pipeline_mode<synchronous>, transform_indices = @transform_2, window_bounds = array<i64: 1, 32>}, {pipeline_mode = #tpu.pipeline_mode<synchronous>, transform_indices = @transform_3, window_bounds = array<i64: 1, 32>}, {transform_indices = @transform_4, window_bounds = array<i64: 1, 1>}, {transform_indices = @transform_5, window_bounds = array<i64: 8, 1>}]} {
    %c0 = arith.constant 0 : index
    %c0_0 = arith.constant 0 : index
    %0 = vector.load %arg1[%c0, %c0_0] : memref<8x4xf32, #tpu.memory_space<vmem>>, vector<8x4xf32>
    %c0_1 = arith.constant 0 : index
    %c0_2 = arith.constant 0 : index
    %1 = vector.load %arg2[%c0_1, %c0_2] : memref<4x32xf32, #tpu.memory_space<vmem>>, vector<4x32xf32>
    %cst = arith.constant dense<0.000000e+00> : vector<8x32xf32>
    %2 = tpu.matmul %0, %1, %cst {dimension_numbers = #tpu.dot_dimension_numbers<[1], [0], [0], [1], [0, 0, 1, 1], [], []>} : vector<8x4xf32>, vector<4x32xf32>, vector<8x32xf32> -> vector<8x32xf32>
    %c0_3 = arith.constant 0 : index
    %c0_4 = arith.constant 0 : index
    %3 = vector.load %arg3[%c0_3, %c0_4] : memref<1x32xf32, #tpu.memory_space<vmem>>, vector<1x32xf32>
    %4 = vector.broadcast %3 : vector<1x32xf32> to vector<8x32xf32>
    %5 = arith.addf %2, %4 : vector<8x32xf32>
    %cst_5 = arith.constant 0.000000e+00 : f32
    %6 = vector.broadcast %cst_5 : f32 to vector<8x32xf32>
    %7 = arith.maximumf %5, %6 : vector<8x32xf32>
    %c0_6 = arith.constant 0 : index
    %c0_7 = arith.constant 0 : index
    %8 = vector.load %arg4[%c0_6, %c0_7] : memref<1x32xf32, #tpu.memory_space<vmem>>, vector<1x32xf32>
    %9 = vector.broadcast %8 : vector<1x32xf32> to vector<8x32xf32>
    %10 = arith.mulf %7, %9 : vector<8x32xf32>
    %cst_8 = arith.constant dense<0.000000e+00> : vector<8xf32>
    %11 = vector.multi_reduction <add>, %10, %cst_8 [1] : vector<8x32xf32> to vector<8xf32>
    %12 = vector.shape_cast %11 : vector<8xf32> to vector<8x1xf32>
    %c0_9 = arith.constant 0 : index
    %c0_10 = arith.constant 0 : index
    %13 = memref.load %arg5[%c0_9, %c0_10] : memref<1x1xf32, #tpu.memory_space<smem>>
    %14 = vector.broadcast %13 : f32 to vector<8x1xf32>
    %15 = arith.addf %12, %14 : vector<8x1xf32>
    %c0_11 = arith.constant 0 : index
    %c0_12 = arith.constant 0 : index
    %16 = vector.load %arg6[%c0_11, %c0_12] : memref<8x1xf32, #tpu.memory_space<vmem>>, vector<8x1xf32>
    tpu.vector_store %arg6[%c0_11, %c0_12], %15 {strides = array<i32>} : memref<8x1xf32, #tpu.memory_space<vmem>>, vector<8x1xf32>,
    return
  }
  func.func @transform_0(%arg0: i32) -> (i32, i32) {
    %c0_i32 = arith.constant 0 : i32
    %c0_i32_0 = arith.constant 0 : i32
    return %arg0, %c0_i32 : i32, i32
  }
  func.func @transform_1(%arg0: i32) -> (i32, i32) {
    %c0_i32 = arith.constant 0 : i32
    %c0_i32_0 = arith.constant 0 : i32
    %c0_i32_1 = arith.constant 0 : i32
    return %c0_i32, %c0_i32_0 : i32, i32
  }
  func.func @transform_2(%arg0: i32) -> (i32, i32) {
    %c0_i32 = arith.constant 0 : i32
    %c0_i32_0 = arith.constant 0 : i32
    %c0_i32_1 = arith.constant 0 : i32
    return %c0_i32, %c0_i32_0 : i32, i32
  }
  func.func @transform_3(%arg0: i32) -> (i32, i32) {
    %c0_i32 = arith.constant 0 : i32
    %c0_i32_0 = arith.constant 0 : i32
    %c0_i32_1 = arith.constant 0 : i32
    return %c0_i32, %c0_i32_0 : i32, i32
  }
  func.func @transform_4(%arg0: i32) -> (i32, i32) {
    %c0_i32 = arith.constant 0 : i32
    %c0_i32_0 = arith.constant 0 : i32
    %c0_i32_1 = arith.constant 0 : i32
    return %c0_i32, %c0_i32_0 : i32, i32
  }
  func.func @transform_5(%arg0: i32) -> (i32, i32) {
    %c0_i32 = arith.constant 0 : i32
    %c0_i32_0 = arith.constant 0 : i32
    return %arg0, %c0_i32 : i32, i32
  }
}

</mosaic_0001>

<bundles_post_ra>
// kernel: tpu_custom_call.1
= control target key start
LH: loop header
LB: loop body
LE: loop exit
PB: predicated region body
PF: predicated region fallthrough
CT: control target
= control target key end

     0   :  { %vm34_vm0 = vcmask 1043456   ;;  %vm30_vm1 = vcmask 31744   ;;  %v143_v0 = vmov 0.0   ;;  %vm144_vm2 = vmmov 0   ;;  %s193_s1 = inlined_call_operand.vmem [shape: f32[4,32], index: 1, kind: input, shape index: {}]   ;;  %s194_s0 = inlined_call_operand.vmem [shape: f32[8,4], index: 0, kind: input, shape index: {}]   ;;  %s195_s2 = inlined_call_operand.vmem [shape: f32[1,32], index: 2, kind: input, shape index: {}]   ;;  %s196_s3 = inlined_call_operand.vmem [shape: f32[1,32], index: 3, kind: input, shape index: {}]   ;;  %s197_s4 = inlined_call_operand.<no memory space> [shape: f32[1,1], index: 4, kind: input, shape index: {}]   ;;  %s198_s5 = inlined_call_operand.vmem [shape: f32[8,1], index: 5, kind: output, shape index: {}]  }
   0x1   :  { %136 = vmatprep.subr.mxu0 %v143_v0  ;;  %v22_v1 = vld [vmem:[%s193_s1] sm:$0xf]  ;;  %138 = vmatprep.mubr.msk.f32.mxu0 %vm144_vm2, %v143_v0  ;;  %vm117_vm3 = vcmask 261120   ;;  %v122_v11 = vstv %s197_s4  ;;  %vm124_vm4 = vcmask 7168  }
   0x2   :  { %v21_v2 = vld [vmem:[%s194_s0] sm:$0xff]  ;;  %137 = vmatpush3.msk.msra.mxu0 %vm34_vm0, %v22_v1 }
   0x3   :  { %139 = vmatmul.mubr.msk.f32.vlgmr.msra.gmra.mxu0 %vm30_vm1, %v21_v2  ;;  %v130_v3 = vld [vmem:[%s195_s2] ss:$0 sm:$0xff] }
   0x4   :  { %v133_v7 = vld [vmem:[%s196_s3] ss:$0 sm:$0xff] }
  0xc3   :  { %v104_v4 = vpop.f32.mrf.mxu0 }
  0xc4   :  { %v105_v5 = vadd.f32 %v130_v3, %v104_v4 }
  0xc5   :  { %v140_v6 = vpop.f32.mrf.mxu0 }
  0xc6   :  { %v108_v8 = vmax.f32 %v105_v5, 0.0 }
  0xc8   :  { %v116_v9 = vmul.f32 %v133_v7, %v108_v8 }
  0xca   :  { %v118_v10 = vsel %vm117_vm3, %v116_v9, 0.0 }
  0xcb   :  { %119 = vadd.xlane.f32.xlu0 %v118_v10 }
 0x154   :  { %v120_v12 = vpop.xlane.xlu0 %119 }
 0x155   :  { %v123_v13 = vadd.f32 %v122_v11, %v120_v12 }
 0x157   :  { %125 = vst.msk [vmem:[%s198_s5] sm:$0xff] %vm124_vm4, %v123_v13 }

</bundles_post_ra>
